<compile_context>
chip_gen: v5e
topology: v5e:2x2
jax: 0.10.0
libtpu: 0.0.40
codegen_flags: <defaults>
</compile_context>

<pallas_src>
import functools

import jax
import jax.numpy as jnp
from jax.experimental import pallas as pl
from jax.experimental.pallas import tpu as pltpu

LANE = 128    # f32 lane width of a vreg
SUBLANE = 8   # f32 sublane count


def _round_up(n, m):
    return ((n + m - 1) // m) * m


def critic_kernel(x_ref, w1_ref, b1_ref, w2_ref, b2_ref, o_ref):
    # x_ref:  (TB, In_p)    f32   VMEM
    # w1_ref: (In_p, H_p)   bf16  VMEM (resident across batch tiles)
    # b1_ref: (1, H_p)      f32   VMEM
    # w2_ref: (H_p, Out_p)  bf16  VMEM (resident across batch tiles)
    # b2_ref: (1, Out_p)    f32   VMEM
    # o_ref:  (TB, Out_p)   f32   VMEM
    x = x_ref[...]
    h = jnp.dot(x.astype(jnp.bfloat16), w1_ref[...],
                preferred_element_type=jnp.float32)       # MXU, bf16 in / f32 acc
    h = jnp.maximum(h + b1_ref[...], 0.0)                  # VPU, f32
    y = jnp.dot(h.astype(jnp.bfloat16), w2_ref[...],
                preferred_element_type=jnp.float32)       # MXU, bf16 in / f32 acc
    o_ref[...] = (y + b2_ref[...]).astype(o_ref.dtype)


@functools.partial(jax.jit, static_argnames=("block_b",))
def critic_forward(x, w1, b1, w2, b2, *, block_b=256):
    B, In = x.shape
    H = w1.shape[1]
    Out = w2.shape[1]

    # Lane/sublane-dense padded shapes.
    In_p = _round_up(In, LANE)
    H_p = _round_up(H, LANE)
    Out_p = _round_up(Out, LANE)
    TB = min(block_b, _round_up(B, SUBLANE))   # batch tile (multiple of 8)
    B_p = _round_up(B, TB)
    num_tiles = B_p // TB

    # Zero-pad operands; weights cast to bf16 once here (they stay resident in
    # VMEM across all batch tiles).  Zero padding is exactly neutral.
    x_p = jnp.zeros((B_p, In_p), jnp.float32).at[:B, :In].set(x)
    w1_p = jnp.zeros((In_p, H_p), jnp.bfloat16).at[:In, :H].set(
        w1.astype(jnp.bfloat16))
    b1_p = jnp.zeros((1, H_p), jnp.float32).at[:, :H].set(
        jnp.reshape(b1, (1, H)))
    w2_p = jnp.zeros((H_p, Out_p), jnp.bfloat16).at[:H, :Out].set(
        w2.astype(jnp.bfloat16))
    b2_p = jnp.zeros((1, Out_p), jnp.float32).at[:, :Out].set(
        jnp.reshape(b2, (1, Out)))

    # Advisory cost for XLA's scheduler.
    flops = 2 * B_p * (In_p * H_p + H_p * Out_p)
    bytes_accessed = (x_p.size * 4 + w1_p.size * 2 + b1_p.size * 4
                      + w2_p.size * 2 + b2_p.size * 4 + B_p * Out_p * 4)
    cost = pl.CostEstimate(flops=flops, transcendentals=0,
                           bytes_accessed=bytes_accessed)

    # VMEM budget: double-buffered x/out tiles + resident weights + scratch,
    # kept well under v7x's smaller per-TC VMEM.
    tile_bytes = 2 * (TB * In_p * 4 + TB * Out_p * 4)
    weight_bytes = 2 * (w1_p.size * 2 + w2_p.size * 2 + (H_p + Out_p) * 4)
    scratch_bytes = TB * H_p * 4 + TB * max(In_p, H_p) * 2
    vmem_limit = int(min(max(2 * (tile_bytes + weight_bytes + scratch_bytes),
                             16 << 20), 64 << 20))

    out_shape = jax.ShapeDtypeStruct((B_p, Out_p), jnp.float32)

    if num_tiles == 1:
        # Tiny case: no grid, no pipelining machinery — whole arrays as single
        # VMEM blocks.
        vmem_spec = pl.BlockSpec(memory_space=pltpu.MemorySpace.VMEM)
        out_p = pl.pallas_call(
            critic_kernel,
            out_shape=out_shape,
            in_specs=[vmem_spec] * 5,
            out_specs=vmem_spec,
            compiler_params=pltpu.CompilerParams(vmem_limit_bytes=vmem_limit),
            cost_estimate=cost,
        )(x_p, w1_p, b1_p, w2_p, b2_p)
    else:
        # Batch-tiled: x/out move per tile, weights/biases are resident
        # (constant index_maps), batch axis is "parallel" for megacore/v7x.
        out_p = pl.pallas_call(
            critic_kernel,
            out_shape=out_shape,
            grid=(num_tiles,),
            in_specs=[
                pl.BlockSpec((TB, In_p), lambda i: (i, 0)),    # x: per tile
                pl.BlockSpec((In_p, H_p), lambda i: (0, 0)),   # W1: resident
                pl.BlockSpec((1, H_p), lambda i: (0, 0)),      # b1: resident
                pl.BlockSpec((H_p, Out_p), lambda i: (0, 0)),  # W2: resident
                pl.BlockSpec((1, Out_p), lambda i: (0, 0)),    # b2: resident
            ],
            out_specs=pl.BlockSpec((TB, Out_p), lambda i: (i, 0)),
            compiler_params=pltpu.CompilerParams(
                dimension_semantics=("parallel",),
                vmem_limit_bytes=vmem_limit),
            cost_estimate=cost,
        )(x_p, w1_p, b1_p, w2_p, b2_p)

    return out_p[:B, :Out]


def init_params(key, input_size, hidden_size, output_size):
    # Mimics nn.Linear's uniform(-1/sqrt(fan_in), 1/sqrt(fan_in)) init, but with
    # weights stored as (in, out).
    k1, k2, k3, k4 = jax.random.split(key, 4)
    s1 = 1.0 / jnp.sqrt(input_size)
    s2 = 1.0 / jnp.sqrt(hidden_size)
    w1 = jax.random.uniform(k1, (input_size, hidden_size), jnp.float32, -s1, s1)
    b1 = jax.random.uniform(k2, (hidden_size,), jnp.float32, -s1, s1)
    w2 = jax.random.uniform(k3, (hidden_size, output_size), jnp.float32, -s2, s2)
    b2 = jax.random.uniform(k4, (output_size,), jnp.float32, -s2, s2)
    return w1, b1, w2, b2


if __name__ == "__main__":
    input_size, hidden_size, output_size = 32, 64, 16

    key = jax.random.PRNGKey(0)
    kx1, kx2, kp = jax.random.split(key, 3)
    w1, b1, w2, b2 = init_params(kp, input_size, hidden_size, output_size)

    def reference(x):
        # Matches kernel numerics: bf16 MXU operands, f32 accumulate,
        # f32 bias/ReLU.
        h = jnp.dot(x.astype(jnp.bfloat16), w1.astype(jnp.bfloat16),
                    preferred_element_type=jnp.float32) + b1[None, :]
        h = jnp.maximum(h, 0.0)
        return jnp.dot(h.astype(jnp.bfloat16), w2.astype(jnp.bfloat16),
                       preferred_element_type=jnp.float32) + b2[None, :]

    # 1) Tiny batch -> single-tile, grid-free path.
    x_small = jax.random.normal(kx1, (8, input_size), jnp.float32)
    out_small = critic_forward(x_small, w1, b1, w2, b2)
    jax.block_until_ready(out_small)
    assert out_small.shape == (8, output_size)
    assert jnp.allclose(out_small, reference(x_small), atol=1e-2, rtol=1e-2)

    # 2) Larger, non-multiple batch -> batch-tiled grid path (resident weights,
    #    parallel batch axis, padded batch rows sliced off).
    x_big = jax.random.normal(kx2, (200, input_size), jnp.float32)
    out_big = critic_forward(x_big, w1, b1, w2, b2, block_b=64)
    jax.block_until_ready(out_big)
    assert out_big.shape == (200, output_size)
    assert jnp.allclose(out_big, reference(x_big), atol=1e-2, rtol=1e-2)

    print("KERNEL_OK")
</pallas_src>

<mosaic_0001>
module attributes {stable_mosaic.version = 11 : i64} {
  func.func @critic_kernel(%arg0: memref<8x128xf32, #tpu.memory_space<vmem>>, %arg1: memref<128x128xbf16, #tpu.memory_space<vmem>>, %arg2: memref<1x128xf32, #tpu.memory_space<vmem>>, %arg3: memref<128x128xbf16, #tpu.memory_space<vmem>>, %arg4: memref<1x128xf32, #tpu.memory_space<vmem>>, %arg5: memref<8x128xf32, #tpu.memory_space<vmem>>) attributes {dimension_semantics = [], scalar_prefetch = 0 : i64, scratch_operands = 0 : i64, tpu.core_type = #tpu.core_type<tc>} {
    %c0 = arith.constant 0 : index
    %c0_0 = arith.constant 0 : index
    %0 = vector.load %arg0[%c0, %c0_0] : memref<8x128xf32, #tpu.memory_space<vmem>>, vector<8x128xf32>
    %1 = arith.truncf %0 : vector<8x128xf32> to vector<8x128xbf16>
    %c0_1 = arith.constant 0 : index
    %c0_2 = arith.constant 0 : index
    %2 = vector.load %arg1[%c0_1, %c0_2] : memref<128x128xbf16, #tpu.memory_space<vmem>>, vector<128x128xbf16>
    %cst = arith.constant dense<0.000000e+00> : vector<8x128xf32>
    %3 = tpu.matmul %1, %2, %cst {dimension_numbers = #tpu.dot_dimension_numbers<[1], [0], [0], [1], [0, 0, 1, 1], [], []>} : vector<8x128xbf16>, vector<128x128xbf16>, vector<8x128xf32> -> vector<8x128xf32>
    %c0_3 = arith.constant 0 : index
    %c0_4 = arith.constant 0 : index
    %4 = vector.load %arg2[%c0_3, %c0_4] : memref<1x128xf32, #tpu.memory_space<vmem>>, vector<1x128xf32>
    %5 = vector.broadcast %4 : vector<1x128xf32> to vector<8x128xf32>
    %6 = arith.addf %3, %5 : vector<8x128xf32>
    %cst_5 = arith.constant 0.000000e+00 : f32
    %7 = vector.broadcast %cst_5 : f32 to vector<8x128xf32>
    %8 = arith.maximumf %6, %7 : vector<8x128xf32>
    %9 = arith.truncf %8 : vector<8x128xf32> to vector<8x128xbf16>
    %c0_6 = arith.constant 0 : index
    %c0_7 = arith.constant 0 : index
    %10 = vector.load %arg3[%c0_6, %c0_7] : memref<128x128xbf16, #tpu.memory_space<vmem>>, vector<128x128xbf16>
    %cst_8 = arith.constant dense<0.000000e+00> : vector<8x128xf32>
    %11 = tpu.matmul %9, %10, %cst_8 {dimension_numbers = #tpu.dot_dimension_numbers<[1], [0], [0], [1], [0, 0, 1, 1], [], []>} : vector<8x128xbf16>, vector<128x128xbf16>, vector<8x128xf32> -> vector<8x128xf32>
    %c0_9 = arith.constant 0 : index
    %c0_10 = arith.constant 0 : index
    %12 = vector.load %arg4[%c0_9, %c0_10] : memref<1x128xf32, #tpu.memory_space<vmem>>, vector<1x128xf32>
    %13 = vector.broadcast %12 : vector<1x128xf32> to vector<8x128xf32>
    %14 = arith.addf %11, %13 : vector<8x128xf32>
    %c0_11 = arith.constant 0 : index
    %c0_12 = arith.constant 0 : index
    %15 = vector.load %arg5[%c0_11, %c0_12] : memref<8x128xf32, #tpu.memory_space<vmem>>, vector<8x128xf32>
    tpu.vector_store %arg5[%c0_11, %c0_12], %14 {strides = array<i32>} : memref<8x128xf32, #tpu.memory_space<vmem>>, vector<8x128xf32>,
    return
  }
}

</mosaic_0001>

<bundles_post_ra>
// kernel: critic_forward.1
= control target key start
LH: loop header
LB: loop body
LE: loop exit
PB: predicated region body
PF: predicated region fallthrough
CT: control target
= control target key end

     0   :  { %s404_s0 = inlined_call_operand.vmem [shape: f32[8,128], index: 0, kind: input, shape index: {}]   ;;  %s405_s1 = inlined_call_operand.vmem [shape: bf16[128,128], index: 1, kind: input, shape index: {}]   ;;  %s406_s2 = inlined_call_operand.vmem [shape: f32[1,128], index: 2, kind: input, shape index: {}]   ;;  %s407_s3 = inlined_call_operand.vmem [shape: bf16[128,128], index: 3, kind: input, shape index: {}]   ;;  %s408_s4 = inlined_call_operand.vmem [shape: f32[1,128], index: 4, kind: input, shape index: {}]   ;;  %s409_s5 = inlined_call_operand.hbm [shape: f32[8,128], index: 5, kind: output, shape index: {}]  }
   0x1   :  { %v275_v0 = vld [vmem:[%s405_s1 + $0x38] sm:$0xff]  ;;  %v274_v1 = vld [vmem:[%s405_s1 + $0x30] sm:$0xff]  ;;  %v273_v4 = vld [vmem:[%s405_s1 + $0x28] sm:$0xff] }
   0x2   :  { %91 = vmatpush.bf16.msra.mxu0 %v275_v0  ;;  %v283_v2 = vld [vmem:[%s407_s3 + $0x38] sm:$0xff]  ;;  %v282_v3 = vld [vmem:[%s407_s3 + $0x30] sm:$0xff] }
   0x3   :  { %174 = vmatpush.bf16.msra.mxu1 %v283_v2 }
   0x6   :  { %92 = vmatpush.bf16.msra.mxu0 %v274_v1 }
   0x7   :  { %10 = vsyncpa [#allocation3], 0  ;;  %175 = vmatpush.bf16.msra.mxu1 %v282_v3  ;;  %v281_v5 = vld [vmem:[%s407_s3 + $0x28] sm:$0xff]  ;;  %v272_v6 = vld [vmem:[%s405_s1 + $0x20] sm:$0xff]  ;;  %s313_s29 = smov [#allocation2]  }
   0x8   :  { %v280_v7 = vld [vmem:[%s407_s3 + $0x20] sm:$0xff]  ;;  %v271_v8 = vld [vmem:[%s405_s1 + $0x18] sm:$0xff]  ;;  %v270_v10 = vld [vmem:[%s405_s1 + $0x10] sm:$0xff]  ;;  %s193_s30 = sshll.u32 %s313_s29, 4  ;;  %s194_s30 = int_to_ptr.vmem [resolvable:$true] %s193_s30 }
   0x9   :  { %v279_v9 = vld [vmem:[%s407_s3 + $0x18] sm:$0xff]  ;;  %v278_v11 = vld [vmem:[%s407_s3 + $0x10] sm:$0xff]  ;;  %v269_v12 = vld [vmem:[%s405_s1 + $0x8] sm:$0xff] }
   0xa   :  { %93 = vmatpush.bf16.msra.mxu0 %v273_v4  ;;  %v268_v13 = vld [vmem:[%s405_s1] sm:$0xff]  ;;  %v277_v16 = vld [vmem:[%s407_s3 + $0x8] sm:$0xff] }
   0xb   :  { %176 = vmatpush.bf16.msra.mxu1 %v281_v5  ;;  %v21_v14 = vld [vmem:[%s404_s0] sm:$0xff] }
   0xc   :  { %v22_v15 = vpack.c.bf16 %v21_v14, %v21_v14  ;;  %v276_v17 = vld [vmem:[%s407_s3] sm:$0xff]  ;;  %s195_s3 = sshll.u32 %s409_s5, 4  ;;  %s196_s3 = int_to_ptr.hbm [resolvable:$true] %s195_s3 }
   0xd   :  { %v285_v18 = vld [vmem:[%s406_s2] ss:$0 sm:$0xff] }
   0xe   :  { %94 = vmatpush.bf16.msra.mxu0 %v272_v6  ;;  %v286_v24 = vld [vmem:[%s408_s4] ss:$0 sm:$0xff] }
   0xf   :  { %177 = vmatpush.bf16.msra.mxu1 %v280_v7 }
  0x12   :  { %95 = vmatpush.bf16.msra.mxu0 %v271_v8 }
  0x13   :  { %178 = vmatpush.bf16.msra.mxu1 %v279_v9 }
  0x16   :  { %96 = vmatpush.bf16.msra.mxu0 %v270_v10 }
  0x17   :  { %179 = vmatpush.bf16.msra.mxu1 %v278_v11 }
  0x1a   :  { %97 = vmatpush.bf16.msra.mxu0 %v269_v12 }
  0x1b   :  { %180 = vmatpush.bf16.msra.mxu1 %v277_v16 }
  0x1e   :  { %98 = vmatpush.bf16.msra.mxu0 %v268_v13 }
  0x1f   :  { %181 = vmatpush.bf16.msra.mxu1 %v276_v17 }
  0x21   :  { %99 = vmatmul.bf16.vlgmr.msra.gmra.mxu0 %v22_v15 }
  0x9e   :  { %v100_v19 = vpop.f32.mrf.mxu0 }
  0x9f   :  { %v101_v20 = vadd.f32 %v285_v18, %v100_v19 }
  0xa1   :  { %v104_v21 = vmax.f32 %v101_v20, 0.0 }
  0xa3   :  { %v105_v22 = vpack.c.bf16 %v104_v21, %v104_v21 }
  0xa5   :  { %182 = vmatmul.bf16.vlgmr.msra.gmra.mxu1 %v105_v22 }
  0xa6   :  { %v102_v23 = vpop.f32.mrf.mxu0 }
 0x122   :  { %v183_v25 = vpop.f32.mrf.mxu1 }
 0x123   :  { %v184_v26 = vadd.f32 %v286_v24, %v183_v25 }
 0x125   :  { %187 = vst [vmem:[#allocation2] sm:$0xff] %v184_v26 }
 0x126   :  { %198 = dma.vmem_to_hbm [thread:$0]  %s194_s30, 128, %s196_s3, [#allocation3]  }
 0x12a   :  { %v185_v27 = vpop.f32.mrf.mxu1 }
 0x12b   :  { %311 = dma.done.wait [#allocation3], 128  }
 0x12c   :  { %312 = vsyncadd [#allocation3], 4294967168 }
 0x12d   :  { %203 = vsyncpa [#allocation3], 1 }

</bundles_post_ra>
